<compile_context>
chip_gen: v7x
topology: tpu7x:2x2x1
jax: 0.10.0
libtpu: 0.0.40
codegen_flags: <defaults>
</compile_context>

<pallas_src>
import math
import functools

import jax
import jax.numpy as jnp
from jax import lax
from jax.experimental import pallas as pl
from jax.experimental.pallas import tpu as pltpu


def _mhatt_kernel(v_ref, k_ref, q_ref, mask_ref,
                  wv_ref, bv_ref, wk_ref, bk_ref, wq_ref, bq_ref,
                  out_ref, kproj_ref, vproj_ref,
                  *, h, dh, dhn, compute_dtype, approx_recip):
    """One grid step = (batch element b, query block qi). All heads computed here."""
    scale = 1.0 / math.sqrt(dhn)
    cdt = compute_dtype

    qi = pl.program_id(1)

    # --- K/V projections depend only on the batch index: run ONCE per batch
    # element (first q block) as full-width matmuls (full MXU column
    # utilization), then rearrange head-major into VMEM scratch. ---
    @pl.when(qi == 0)
    def _project_kv():
        kp = jnp.dot(k_ref[...], wk_ref[...],
                     preferred_element_type=jnp.float32) + bk_ref[...]   # [Lk, Dn] f32
        vp = jnp.dot(v_ref[...], wv_ref[...],
                     preferred_element_type=jnp.float32) + bv_ref[...]   # [Lv, D]  f32
        for hd in range(h):                                              # static, per-batch only
            kproj_ref[hd] = kp[:, hd * dhn:(hd + 1) * dhn].astype(cdt)
            vproj_ref[hd] = vp[:, hd * dh:(hd + 1) * dh].astype(cdt)

    # --- Per-step: one full-width Q projection (scale folded in, f32), then
    # per-head attention.  Mask compare hoisted out of the head loop and kept
    # [1, Lk]; the select broadcasts it (no [tq, Lk] bias tile). ---
    qfull = (jnp.dot(q_ref[...], wq_ref[...],
                     preferred_element_type=jnp.float32)
             + bq_ref[...]) * scale                                      # [tq, Dn] f32
    masked = mask_ref[...] != 0                                          # [1, Lk] bool

    for hd in range(h):                                                  # h small & static
        qh = qfull[:, hd * dhn:(hd + 1) * dhn].astype(cdt)               # [tq, dhn]
        kh = kproj_ref[hd]                                               # [Lk, dhn] (cdt)
        vh = vproj_ref[hd]                                               # [Lv, dh]  (cdt)

        # scores = qh @ kh^T -- transpose absorbed via dot_general dnums.
        scores = lax.dot_general(qh, kh, (((1,), (1,)), ((), ())),
                                 preferred_element_type=jnp.float32)     # [tq, Lk] f32
        # masked_fill semantics (replacement), [1, Lk] condition broadcasts.
        scores = jnp.where(masked, jnp.float32(-1000000000.0), scores)

        # Numerically-stable softmax along keys; normalization applied to the
        # small [tq, dh] PV result instead of the [tq, Lk] probabilities.
        scores = scores - jnp.max(scores, axis=-1, keepdims=True)
        p = jnp.exp(scores)                                              # f32 (EUP); bf16-exp
        s = jnp.sum(p, axis=-1, keepdims=True)                           # possible if EUP-bound
        if approx_recip:
            inv = pl.reciprocal(s, approx=True)                          # EUP slot (fast path)
        else:
            inv = 1.0 / s                                                # exact (strict path)

        # TODO(synk): nn.Dropout(drop_r) on the attention map omitted (eval-mode identity).
        oh = jnp.dot(p.astype(cdt), vh,
                     preferred_element_type=jnp.float32)                 # [tq, dh] f32
        # Stream each head's result straight into the output block at its
        # static lane offset (no concatenate; bounds per-head live ranges).
        out_ref[:, hd * dh:(hd + 1) * dh] = (oh * inv).astype(out_ref.dtype)


def _round_up(x, m):
    return (x + m - 1) // m * m


def mhatt_pallas(v, k, q, mask, params, *, dh, h, n, fast_math=False,
                 q_block=256, out_dtype=jnp.float32, weight_buffer_count=None):
    """Pallas MHAtt forward.  v/k/q: [B, L, d_model]; mask: [B,1,1,Lk] bool (True==masked)."""
    B, Lq, D = q.shape
    Lk = k.shape[1]
    Lv = v.shape[1]
    dhn = int(dh * n)
    Dn = int(D * n)
    assert D == h * dh and Dn == h * dhn, "d_model must equal h*dh (and *n for k/q)"

    # Torch-style bool mask [B,1,1,Lk] (True == masked) -> [B,1,Lk] int32.
    mask_i = mask.astype(jnp.int32).reshape(B, 1, Lk)

    # MXU operand / scratch dtype.  Fast path: cast inputs & weights ONCE in
    # the wrapper (halves DMA + VMEM, removes per-step in-kernel casts).
    cdt = jnp.bfloat16 if fast_math else jnp.float32
    v_in, k_in, q_in = (x.astype(cdt) for x in (v, k, q))
    wv = params["wv"].astype(cdt)                       # [D, D]
    wk = params["wk"].astype(cdt)                       # [D, Dn]
    wq = params["wq"].astype(cdt)                       # [D, Dn]
    bv = params["bv"].astype(jnp.float32).reshape(1, D)
    bk = params["bk"].astype(jnp.float32).reshape(1, Dn)
    bq = params["bq"].astype(jnp.float32).reshape(1, Dn)

    # Query-axis tiling: keeps large Lq inside scoped VMEM (64 MiB physical on
    # v7x) and gives the pipeline grid steps to overlap.
    tq = min(Lq, int(q_block))
    nq = pl.cdiv(Lq, tq)

    isz = jnp.dtype(cdt).itemsize

    def padded_bytes(r, c, item):
        return _round_up(r, 8) * _round_up(c, 128) * item

    # VMEM residency estimate (double-buffered pipeline blocks + scratch) used
    # to set vmem_limit_bytes explicitly (scoped defaults are 16/32 MiB).
    est = 2 * (padded_bytes(Lv, D, isz) + padded_bytes(Lk, D, isz)
               + padded_bytes(tq, D, isz) + padded_bytes(1, Lk, 4))
    wbuf = 1 if weight_buffer_count == 1 else 2
    est += wbuf * (padded_bytes(D, D, isz) + 2 * padded_bytes(D, Dn, isz)
                   + padded_bytes(1, D, 4) + 2 * padded_bytes(1, Dn, 4))
    est += 2 * padded_bytes(tq, D, jnp.dtype(out_dtype).itemsize)
    est += h * (padded_bytes(Lk, dhn, isz) + padded_bytes(Lv, dh, isz))
    vmem_limit = max(32 << 20, min(int(1.5 * est) + (4 << 20), 128 << 20))

    def const_spec(shape):
        idx = lambda b, qi: (0,) * len(shape)
        if weight_buffer_count is None:
            return pl.BlockSpec(shape, idx)
        # e.g. weight_buffer_count=1 on v7x to halve weight VMEM residency.
        return pl.BlockSpec(shape, idx, pipeline_mode=pl.Buffered(weight_buffer_count))

    kernel = functools.partial(_mhatt_kernel, h=h, dh=dh, dhn=dhn,
                               compute_dtype=cdt, approx_recip=fast_math)

    # NOTE: the qi==0 K/V-projection cache relies on the batch axis staying
    # grid axis 0 ("parallel") and the query-block axis staying "arbitrary",
    # so each batch element's q blocks run in order on one core.  Do not
    # reorder the grid axes or mark qi parallel.
    # TODO(synk): on v7x with B==1 per chip, split the query-block axis across
    # the two TensorCores (core_map) instead of relying on the batch axis.
    return pl.pallas_call(
        kernel,
        out_shape=jax.ShapeDtypeStruct((B, Lq, D), out_dtype),
        grid_spec=pltpu.PrefetchScalarGridSpec(
            num_scalar_prefetch=0,
            grid=(B, nq),
            in_specs=[
                pl.BlockSpec((None, Lv, D), lambda b, qi: (b, 0, 0)),   # v
                pl.BlockSpec((None, Lk, D), lambda b, qi: (b, 0, 0)),   # k
                pl.BlockSpec((None, tq, D), lambda b, qi: (b, qi, 0)),  # q (tiled)
                pl.BlockSpec((None, 1, Lk), lambda b, qi: (b, 0, 0)),   # mask
                const_spec((D, D)),                                     # Wv
                const_spec((1, D)),                                     # bv
                const_spec((D, Dn)),                                    # Wk
                const_spec((1, Dn)),                                    # bk
                const_spec((D, Dn)),                                    # Wq
                const_spec((1, Dn)),                                    # bq
            ],
            out_specs=pl.BlockSpec((None, tq, D), lambda b, qi: (b, qi, 0)),
            scratch_shapes=[
                pltpu.VMEM((h, Lk, dhn), cdt),   # cached K projection (head-major)
                pltpu.VMEM((h, Lv, dh), cdt),    # cached V projection (head-major)
            ],
        ),
        compiler_params=pltpu.CompilerParams(
            dimension_semantics=("parallel", "arbitrary"),
            vmem_limit_bytes=vmem_limit),
    )(v_in, k_in, q_in, mask_i, wv, bv, wk, bk, wq, bq)


def mhatt_ref(v, k, q, mask, params, *, dh, h, n, d_model):
    """Pure-JAX reference mirroring the PyTorch forward (dropout in eval mode)."""
    prec = jax.lax.Precision.HIGHEST
    B = q.shape[0]
    dhn = int(dh * n)
    V = jnp.dot(v, params["wv"], precision=prec) + params["bv"][0]
    K = jnp.dot(k, params["wk"], precision=prec) + params["bk"][0]
    Q = jnp.dot(q, params["wq"], precision=prec) + params["bq"][0]
    V = V.reshape(B, -1, h, dh).transpose(0, 2, 1, 3)      # [B, h, Lv, dh]
    K = K.reshape(B, -1, h, dhn).transpose(0, 2, 1, 3)     # [B, h, Lk, dh*n]
    Q = Q.reshape(B, -1, h, dhn).transpose(0, 2, 1, 3)     # [B, h, Lq, dh*n]
    scores = jnp.einsum("bhqd,bhkd->bhqk", Q, K, precision=prec) / math.sqrt(dhn)
    scores = jnp.where(mask, -1000000000.0, scores)
    p = jax.nn.softmax(scores, axis=-1)
    out = jnp.einsum("bhqk,bhkd->bhqd", p, V, precision=prec)
    return out.transpose(0, 2, 1, 3).reshape(B, -1, d_model)


if __name__ == "__main__":
    # Small shapes consistent with the module: d_model = h * dh.
    B, L = 2, 8
    d_model, h, dh, n = 32, 4, 8, 1
    Dn = int(d_model * n)

    key = jax.random.PRNGKey(0)
    kv, kk, kq, km, k1, k2, k3, k4, k5, k6 = jax.random.split(key, 10)

    v = jax.random.normal(kv, (B, L, d_model), dtype=jnp.float32)
    k = jax.random.normal(kk, (B, L, d_model), dtype=jnp.float32)
    q = jax.random.normal(kq, (B, L, d_model), dtype=jnp.float32)
    mask = jax.random.bernoulli(km, 0.2, (B, 1, 1, L))  # True == masked

    # Deterministic synthetic parameters (Linear weights stored as [in, out]).
    s = 1.0 / math.sqrt(d_model)
    params = {
        "wv": jax.random.uniform(k1, (d_model, d_model), jnp.float32, -s, s),
        "bv": jax.random.uniform(k2, (1, d_model), jnp.float32, -s, s),
        "wk": jax.random.uniform(k3, (d_model, Dn), jnp.float32, -s, s),
        "bk": jax.random.uniform(k4, (1, Dn), jnp.float32, -s, s),
        "wq": jax.random.uniform(k5, (d_model, Dn), jnp.float32, -s, s),
        "bq": jax.random.uniform(k6, (1, Dn), jnp.float32, -s, s),
    }

    ref = mhatt_ref(v, k, q, mask, params, dh=dh, h=h, n=n, d_model=d_model)

    # Strict f32 path.
    out = mhatt_pallas(v, k, q, mask, params, dh=dh, h=h, n=n, fast_math=False)
    out = jax.block_until_ready(out)
    assert out.shape == (B, L, d_model)
    assert jnp.allclose(out, ref, atol=1e-4, rtol=1e-4), "f32 path mismatch vs reference"

    # Fast path: bf16 MXU operands / scratch (f32 accumulate) + approx reciprocal.
    out_fast = mhatt_pallas(v, k, q, mask, params, dh=dh, h=h, n=n, fast_math=True)
    out_fast = jax.block_until_ready(out_fast)
    assert jnp.allclose(out_fast, ref, atol=5e-2, rtol=5e-2), "bf16 path mismatch vs reference"

    print("KERNEL_OK")
</pallas_src>

<mosaic_0001>
module attributes {stable_mosaic.version = 11 : i64} {
  func.func @_mhatt_kernel(%arg0: i32, %arg1: i32, %arg2: memref<1x8x32xf32, #tpu.memory_space<vmem>>, %arg3: memref<1x8x32xf32, #tpu.memory_space<vmem>>, %arg4: memref<1x8x32xf32, #tpu.memory_space<vmem>>, %arg5: memref<1x1x8xi32, #tpu.memory_space<vmem>>, %arg6: memref<32x32xf32, #tpu.memory_space<vmem>>, %arg7: memref<1x32xf32, #tpu.memory_space<vmem>>, %arg8: memref<32x32xf32, #tpu.memory_space<vmem>>, %arg9: memref<1x32xf32, #tpu.memory_space<vmem>>, %arg10: memref<32x32xf32, #tpu.memory_space<vmem>>, %arg11: memref<1x32xf32, #tpu.memory_space<vmem>>, %arg12: memref<1x8x32xf32, #tpu.memory_space<vmem>>, %arg13: memref<4x8x8xf32, #tpu.memory_space<vmem>>, %arg14: memref<4x8x8xf32, #tpu.memory_space<vmem>>) attributes {dimension_semantics = [#tpu.dimension_semantics<parallel>, #tpu.dimension_semantics<arbitrary>], iteration_bounds = array<i64: 2, 1>, scalar_prefetch = 0 : i64, scratch_operands = 2 : i64, tpu.core_type = #tpu.core_type<tc>, window_params = [{transform_indices = @transform_0, window_bounds = array<i64: 1, 8, 32>}, {transform_indices = @transform_1, window_bounds = array<i64: 1, 8, 32>}, {transform_indices = @transform_2, window_bounds = array<i64: 1, 8, 32>}, {transform_indices = @transform_3, window_bounds = array<i64: 1, 1, 8>}, {pipeline_mode = #tpu.pipeline_mode<synchronous>, transform_indices = @transform_4, window_bounds = array<i64: 32, 32>}, {pipeline_mode = #tpu.pipeline_mode<synchronous>, transform_indices = @transform_5, window_bounds = array<i64: 1, 32>}, {pipeline_mode = #tpu.pipeline_mode<synchronous>, transform_indices = @transform_6, window_bounds = array<i64: 32, 32>}, {pipeline_mode = #tpu.pipeline_mode<synchronous>, transform_indices = @transform_7, window_bounds = array<i64: 1, 32>}, {pipeline_mode = #tpu.pipeline_mode<synchronous>, transform_indices = @transform_8, window_bounds = array<i64: 32, 32>}, {pipeline_mode = #tpu.pipeline_mode<synchronous>, transform_indices = @transform_9, window_bounds = array<i64: 1, 32>}, {transform_indices = @transform_10, window_bounds = array<i64: 1, 8, 32>}]} {
    %c0_i32 = arith.constant 0 : i32
    %0 = arith.cmpi eq, %arg1, %c0_i32 : i32
    %1 = arith.extui %0 : i1 to i32
    %c0_i32_0 = arith.constant 0 : i32
    %2 = arith.cmpi ne, %1, %c0_i32_0 : i32
    scf.if %2 {
      %c0_66 = arith.constant 0 : index
      %c0_67 = arith.constant 0 : index
      %c0_68 = arith.constant 0 : index
      %116 = vector.load %arg3[%c0_66, %c0_67, %c0_68] : memref<1x8x32xf32, #tpu.memory_space<vmem>>, vector<1x8x32xf32>
      %117 = vector.shape_cast %116 : vector<1x8x32xf32> to vector<8x32xf32>
      %c0_69 = arith.constant 0 : index
      %c0_70 = arith.constant 0 : index
      %118 = vector.load %arg8[%c0_69, %c0_70] : memref<32x32xf32, #tpu.memory_space<vmem>>, vector<32x32xf32>
      %cst_71 = arith.constant dense<0.000000e+00> : vector<8x32xf32>
      %119 = tpu.matmul %117, %118, %cst_71 {dimension_numbers = #tpu.dot_dimension_numbers<[1], [0], [0], [1], [0, 0, 1, 1], [], []>} : vector<8x32xf32>, vector<32x32xf32>, vector<8x32xf32> -> vector<8x32xf32>
      %c0_72 = arith.constant 0 : index
      %c0_73 = arith.constant 0 : index
      %120 = vector.load %arg9[%c0_72, %c0_73] : memref<1x32xf32, #tpu.memory_space<vmem>>, vector<1x32xf32>
      %121 = vector.broadcast %120 : vector<1x32xf32> to vector<8x32xf32>
      %122 = arith.addf %119, %121 : vector<8x32xf32>
      %c0_74 = arith.constant 0 : index
      %c0_75 = arith.constant 0 : index
      %c0_76 = arith.constant 0 : index
      %123 = vector.load %arg2[%c0_74, %c0_75, %c0_76] : memref<1x8x32xf32, #tpu.memory_space<vmem>>, vector<1x8x32xf32>
      %124 = vector.shape_cast %123 : vector<1x8x32xf32> to vector<8x32xf32>
      %c0_77 = arith.constant 0 : index
      %c0_78 = arith.constant 0 : index
      %125 = vector.load %arg6[%c0_77, %c0_78] : memref<32x32xf32, #tpu.memory_space<vmem>>, vector<32x32xf32>
      %cst_79 = arith.constant dense<0.000000e+00> : vector<8x32xf32>
      %126 = tpu.matmul %124, %125, %cst_79 {dimension_numbers = #tpu.dot_dimension_numbers<[1], [0], [0], [1], [0, 0, 1, 1], [], []>} : vector<8x32xf32>, vector<32x32xf32>, vector<8x32xf32> -> vector<8x32xf32>
      %c0_80 = arith.constant 0 : index
      %c0_81 = arith.constant 0 : index
      %127 = vector.load %arg7[%c0_80, %c0_81] : memref<1x32xf32, #tpu.memory_space<vmem>>, vector<1x32xf32>
      %128 = vector.broadcast %127 : vector<1x32xf32> to vector<8x32xf32>
      %129 = arith.addf %126, %128 : vector<8x32xf32>
      %130 = vector.extract_strided_slice %122 {offsets = [0, 0], sizes = [8, 8], strides = [1, 1]} : vector<8x32xf32> to vector<8x8xf32>
      %c0_82 = arith.constant 0 : index
      %c0_83 = arith.constant 0 : index
      %c0_84 = arith.constant 0 : index
      %131 = vector.load %arg13[%c0_82, %c0_83, %c0_84] : memref<4x8x8xf32, #tpu.memory_space<vmem>>, vector<1x8x8xf32>
      %132 = vector.shape_cast %131 : vector<1x8x8xf32> to vector<8x8xf32>
      %133 = vector.shape_cast %130 : vector<8x8xf32> to vector<1x8x8xf32>
      tpu.vector_store %arg13[%c0_82, %c0_83, %c0_84], %133 {strides = array<i32>} : memref<4x8x8xf32, #tpu.memory_space<vmem>>, vector<1x8x8xf32>,
      %134 = vector.extract_strided_slice %129 {offsets = [0, 0], sizes = [8, 8], strides = [1, 1]} : vector<8x32xf32> to vector<8x8xf32>
      %c0_85 = arith.constant 0 : index
      %c0_86 = arith.constant 0 : index
      %c0_87 = arith.constant 0 : index
      %135 = vector.load %arg14[%c0_85, %c0_86, %c0_87] : memref<4x8x8xf32, #tpu.memory_space<vmem>>, vector<1x8x8xf32>
      %136 = vector.shape_cast %135 : vector<1x8x8xf32> to vector<8x8xf32>
      %137 = vector.shape_cast %134 : vector<8x8xf32> to vector<1x8x8xf32>
      tpu.vector_store %arg14[%c0_85, %c0_86, %c0_87], %137 {strides = array<i32>} : memref<4x8x8xf32, #tpu.memory_space<vmem>>, vector<1x8x8xf32>,
      %138 = vector.extract_strided_slice %122 {offsets = [0, 8], sizes = [8, 8], strides = [1, 1]} : vector<8x32xf32> to vector<8x8xf32>
      %c1_88 = arith.constant 1 : index
      %c0_89 = arith.constant 0 : index
      %c0_90 = arith.constant 0 : index
      %139 = vector.load %arg13[%c1_88, %c0_89, %c0_90] : memref<4x8x8xf32, #tpu.memory_space<vmem>>, vector<1x8x8xf32>
      %140 = vector.shape_cast %139 : vector<1x8x8xf32> to vector<8x8xf32>
      %141 = vector.shape_cast %138 : vector<8x8xf32> to vector<1x8x8xf32>
      tpu.vector_store %arg13[%c1_88, %c0_89, %c0_90], %141 {strides = array<i32>} : memref<4x8x8xf32, #tpu.memory_space<vmem>>, vector<1x8x8xf32>,
      %142 = vector.extract_strided_slice %129 {offsets = [0, 8], sizes = [8, 8], strides = [1, 1]} : vector<8x32xf32> to vector<8x8xf32>
      %c1_91 = arith.constant 1 : index
      %c0_92 = arith.constant 0 : index
      %c0_93 = arith.constant 0 : index
      %143 = vector.load %arg14[%c1_91, %c0_92, %c0_93] : memref<4x8x8xf32, #tpu.memory_space<vmem>>, vector<1x8x8xf32>
      %144 = vector.shape_cast %143 : vector<1x8x8xf32> to vector<8x8xf32>
      %145 = vector.shape_cast %142 : vector<8x8xf32> to vector<1x8x8xf32>
      tpu.vector_store %arg14[%c1_91, %c0_92, %c0_93], %145 {strides = array<i32>} : memref<4x8x8xf32, #tpu.memory_space<vmem>>, vector<1x8x8xf32>,
      %146 = vector.extract_strided_slice %122 {offsets = [0, 16], sizes = [8, 8], strides = [1, 1]} : vector<8x32xf32> to vector<8x8xf32>
      %c2_94 = arith.constant 2 : index
      %c0_95 = arith.constant 0 : index
      %c0_96 = arith.constant 0 : index
      %147 = vector.load %arg13[%c2_94, %c0_95, %c0_96] : memref<4x8x8xf32, #tpu.memory_space<vmem>>, vector<1x8x8xf32>
      %148 = vector.shape_cast %147 : vector<1x8x8xf32> to vector<8x8xf32>
      %149 = vector.shape_cast %146 : vector<8x8xf32> to vector<1x8x8xf32>
      tpu.vector_store %arg13[%c2_94, %c0_95, %c0_96], %149 {strides = array<i32>} : memref<4x8x8xf32, #tpu.memory_space<vmem>>, vector<1x8x8xf32>,
      %150 = vector.extract_strided_slice %129 {offsets = [0, 16], sizes = [8, 8], strides = [1, 1]} : vector<8x32xf32> to vector<8x8xf32>
      %c2_97 = arith.constant 2 : index
      %c0_98 = arith.constant 0 : index
      %c0_99 = arith.constant 0 : index
      %151 = vector.load %arg14[%c2_97, %c0_98, %c0_99] : memref<4x8x8xf32, #tpu.memory_space<vmem>>, vector<1x8x8xf32>
      %152 = vector.shape_cast %151 : vector<1x8x8xf32> to vector<8x8xf32>
      %153 = vector.shape_cast %150 : vector<8x8xf32> to vector<1x8x8xf32>
      tpu.vector_store %arg14[%c2_97, %c0_98, %c0_99], %153 {strides = array<i32>} : memref<4x8x8xf32, #tpu.memory_space<vmem>>, vector<1x8x8xf32>,
      %154 = vector.extract_strided_slice %122 {offsets = [0, 24], sizes = [8, 8], strides = [1, 1]} : vector<8x32xf32> to vector<8x8xf32>
      %c3_100 = arith.constant 3 : index
      %c0_101 = arith.constant 0 : index
      %c0_102 = arith.constant 0 : index
      %155 = vector.load %arg13[%c3_100, %c0_101, %c0_102] : memref<4x8x8xf32, #tpu.memory_space<vmem>>, vector<1x8x8xf32>
      %156 = vector.shape_cast %155 : vector<1x8x8xf32> to vector<8x8xf32>
      %157 = vector.shape_cast %154 : vector<8x8xf32> to vector<1x8x8xf32>
      tpu.vector_store %arg13[%c3_100, %c0_101, %c0_102], %157 {strides = array<i32>} : memref<4x8x8xf32, #tpu.memory_space<vmem>>, vector<1x8x8xf32>,
      %158 = vector.extract_strided_slice %129 {offsets = [0, 24], sizes = [8, 8], strides = [1, 1]} : vector<8x32xf32> to vector<8x8xf32>
      %c3_103 = arith.constant 3 : index
      %c0_104 = arith.constant 0 : index
      %c0_105 = arith.constant 0 : index
      %159 = vector.load %arg14[%c3_103, %c0_104, %c0_105] : memref<4x8x8xf32, #tpu.memory_space<vmem>>, vector<1x8x8xf32>
      %160 = vector.shape_cast %159 : vector<1x8x8xf32> to vector<8x8xf32>
      %161 = vector.shape_cast %158 : vector<8x8xf32> to vector<1x8x8xf32>
      tpu.vector_store %arg14[%c3_103, %c0_104, %c0_105], %161 {strides = array<i32>} : memref<4x8x8xf32, #tpu.memory_space<vmem>>, vector<1x8x8xf32>,
    } else {
    }
    %c0 = arith.constant 0 : index
    %c0_1 = arith.constant 0 : index
    %c0_2 = arith.constant 0 : index
    %3 = vector.load %arg4[%c0, %c0_1, %c0_2] : memref<1x8x32xf32, #tpu.memory_space<vmem>>, vector<1x8x32xf32>
    %4 = vector.shape_cast %3 : vector<1x8x32xf32> to vector<8x32xf32>
    %c0_3 = arith.constant 0 : index
    %c0_4 = arith.constant 0 : index
    %5 = vector.load %arg10[%c0_3, %c0_4] : memref<32x32xf32, #tpu.memory_space<vmem>>, vector<32x32xf32>
    %cst = arith.constant dense<0.000000e+00> : vector<8x32xf32>
    %6 = tpu.matmul %4, %5, %cst {dimension_numbers = #tpu.dot_dimension_numbers<[1], [0], [0], [1], [0, 0, 1, 1], [], []>} : vector<8x32xf32>, vector<32x32xf32>, vector<8x32xf32> -> vector<8x32xf32>
    %c0_5 = arith.constant 0 : index
    %c0_6 = arith.constant 0 : index
    %7 = vector.load %arg11[%c0_5, %c0_6] : memref<1x32xf32, #tpu.memory_space<vmem>>, vector<1x32xf32>
    %8 = vector.broadcast %7 : vector<1x32xf32> to vector<8x32xf32>
    %9 = arith.addf %6, %8 : vector<8x32xf32>
    %cst_7 = arith.constant 0.353553385 : f32
    %10 = vector.broadcast %cst_7 : f32 to vector<8x32xf32>
    %11 = arith.mulf %9, %10 : vector<8x32xf32>
    %c0_8 = arith.constant 0 : index
    %c0_9 = arith.constant 0 : index
    %c0_10 = arith.constant 0 : index
    %12 = vector.load %arg5[%c0_8, %c0_9, %c0_10] : memref<1x1x8xi32, #tpu.memory_space<vmem>>, vector<1x1x8xi32>
    %13 = vector.shape_cast %12 : vector<1x1x8xi32> to vector<1x8xi32>
    %c0_i32_11 = arith.constant 0 : i32
    %14 = vector.broadcast %c0_i32_11 : i32 to vector<1x8xi32>
    %15 = arith.cmpi ne, %13, %14 : vector<1x8xi32>
    %16 = vector.extract_strided_slice %11 {offsets = [0, 0], sizes = [8, 8], strides = [1, 1]} : vector<8x32xf32> to vector<8x8xf32>
    %c0_12 = arith.constant 0 : index
    %c0_13 = arith.constant 0 : index
    %c0_14 = arith.constant 0 : index
    %17 = vector.load %arg13[%c0_12, %c0_13, %c0_14] : memref<4x8x8xf32, #tpu.memory_space<vmem>>, vector<1x8x8xf32>
    %18 = vector.shape_cast %17 : vector<1x8x8xf32> to vector<8x8xf32>
    %c0_15 = arith.constant 0 : index
    %c0_16 = arith.constant 0 : index
    %c0_17 = arith.constant 0 : index
    %19 = vector.load %arg14[%c0_15, %c0_16, %c0_17] : memref<4x8x8xf32, #tpu.memory_space<vmem>>, vector<1x8x8xf32>
    %20 = vector.shape_cast %19 : vector<1x8x8xf32> to vector<8x8xf32>
    %cst_18 = arith.constant dense<0.000000e+00> : vector<8x8xf32>
    %21 = tpu.matmul %16, %18, %cst_18 {dimension_numbers = #tpu.dot_dimension_numbers<[1], [1], [0], [0], [0, 0, 1, 0], [], []>} : vector<8x8xf32>, vector<8x8xf32>, vector<8x8xf32> -> vector<8x8xf32>
    %cst_19 = arith.constant -1.000000e+09 : f32
    %22 = vector.shape_cast %15 : vector<1x8xi1> to vector<1x8xi1>
    %23 = vector.broadcast %22 : vector<1x8xi1> to vector<8x8xi1>
    %24 = vector.broadcast %cst_19 : f32 to vector<8x8xf32>
    %25 = arith.select %23, %24, %21 : vector<8x8xi1>, vector<8x8xf32>
    %cst_20 = arith.constant dense<0xFF800000> : vector<8xf32>
    %26 = vector.multi_reduction <maximumf>, %25, %cst_20 [1] : vector<8x8xf32> to vector<8xf32>
    %27 = vector.shape_cast %26 : vector<8xf32> to vector<8x1xf32>
    %28 = vector.broadcast %27 : vector<8x1xf32> to vector<8x8xf32>
    %29 = arith.subf %25, %28 : vector<8x8xf32>
    %30 = math.exp %29 : vector<8x8xf32>
    %cst_21 = arith.constant dense<0.000000e+00> : vector<8xf32>
    %31 = vector.multi_reduction <add>, %30, %cst_21 [1] : vector<8x8xf32> to vector<8xf32>
    %32 = vector.shape_cast %31 : vector<8xf32> to vector<8x1xf32>
    %cst_22 = arith.constant 1.000000e+00 : f32
    %33 = vector.broadcast %cst_22 : f32 to vector<8x1xf32>
    %34 = arith.divf %33, %32 : vector<8x1xf32>
    %cst_23 = arith.constant dense<0.000000e+00> : vector<8x8xf32>
    %35 = tpu.matmul %30, %20, %cst_23 {dimension_numbers = #tpu.dot_dimension_numbers<[1], [0], [0], [1], [0, 0, 1, 1], [], []>} : vector<8x8xf32>, vector<8x8xf32>, vector<8x8xf32> -> vector<8x8xf32>
    %36 = vector.broadcast %34 : vector<8x1xf32> to vector<8x8xf32>
    %37 = arith.mulf %35, %36 : vector<8x8xf32>
    %c0_24 = arith.constant 0 : index
    %c0_25 = arith.constant 0 : index
    %c0_26 = arith.constant 0 : index
    %38 = vector.load %arg12[%c0_24, %c0_25, %c0_26] : memref<1x8x32xf32, #tpu.memory_space<vmem>>, vector<1x8x8xf32>
    %39 = vector.shape_cast %38 : vector<1x8x8xf32> to vector<8x8xf32>
    %40 = vector.shape_cast %37 : vector<8x8xf32> to vector<1x8x8xf32>
    tpu.vector_store %arg12[%c0_24, %c0_25, %c0_26], %40 {strides = array<i32>} : memref<1x8x32xf32, #tpu.memory_space<vmem>>, vector<1x8x8xf32>,
    %41 = vector.extract_strided_slice %11 {offsets = [0, 8], sizes = [8, 8], strides = [1, 1]} : vector<8x32xf32> to vector<8x8xf32>
    %c1 = arith.constant 1 : index
    %c0_27 = arith.constant 0 : index
    %c0_28 = arith.constant 0 : index
    %42 = vector.load %arg13[%c1, %c0_27, %c0_28] : memref<4x8x8xf32, #tpu.memory_space<vmem>>, vector<1x8x8xf32>
    %43 = vector.shape_cast %42 : vector<1x8x8xf32> to vector<8x8xf32>
    %c1_29 = arith.constant 1 : index
    %c0_30 = arith.constant 0 : index
    %c0_31 = arith.constant 0 : index
    %44 = vector.load %arg14[%c1_29, %c0_30, %c0_31] : memref<4x8x8xf32, #tpu.memory_space<vmem>>, vector<1x8x8xf32>
    %45 = vector.shape_cast %44 : vector<1x8x8xf32> to vector<8x8xf32>
    %cst_32 = arith.constant dense<0.000000e+00> : vector<8x8xf32>
    %46 = tpu.matmul %41, %43, %cst_32 {dimension_numbers = #tpu.dot_dimension_numbers<[1], [1], [0], [0], [0, 0, 1, 0], [], []>} : vector<8x8xf32>, vector<8x8xf32>, vector<8x8xf32> -> vector<8x8xf32>
    %cst_33 = arith.constant -1.000000e+09 : f32
    %47 = vector.shape_cast %15 : vector<1x8xi1> to vector<1x8xi1>
    %48 = vector.broadcast %47 : vector<1x8xi1> to vector<8x8xi1>
    %49 = vector.broadcast %cst_33 : f32 to vector<8x8xf32>
    %50 = arith.select %48, %49, %46 : vector<8x8xi1>, vector<8x8xf32>
    %cst_34 = arith.constant dense<0xFF800000> : vector<8xf32>
    %51 = vector.multi_reduction <maximumf>, %50, %cst_34 [1] : vector<8x8xf32> to vector<8xf32>
    %52 = vector.shape_cast %51 : vector<8xf32> to vector<8x1xf32>
    %53 = vector.broadcast %52 : vector<8x1xf32> to vector<8x8xf32>
    %54 = arith.subf %50, %53 : vector<8x8xf32>
    %55 = math.exp %54 : vector<8x8xf32>
    %cst_35 = arith.constant dense<0.000000e+00> : vector<8xf32>
    %56 = vector.multi_reduction <add>, %55, %cst_35 [1] : vector<8x8xf32> to vector<8xf32>
    %57 = vector.shape_cast %56 : vector<8xf32> to vector<8x1xf32>
    %cst_36 = arith.constant 1.000000e+00 : f32
    %58 = vector.broadcast %cst_36 : f32 to vector<8x1xf32>
    %59 = arith.divf %58, %57 : vector<8x1xf32>
    %cst_37 = arith.constant dense<0.000000e+00> : vector<8x8xf32>
    %60 = tpu.matmul %55, %45, %cst_37 {dimension_numbers = #tpu.dot_dimension_numbers<[1], [0], [0], [1], [0, 0, 1, 1], [], []>} : vector<8x8xf32>, vector<8x8xf32>, vector<8x8xf32> -> vector<8x8xf32>
    %61 = vector.broadcast %59 : vector<8x1xf32> to vector<8x8xf32>
    %62 = arith.mulf %60, %61 : vector<8x8xf32>
    %c0_38 = arith.constant 0 : index
    %c0_39 = arith.constant 0 : index
    %c8 = arith.constant 8 : index
    %63 = vector.load %arg12[%c0_38, %c0_39, %c8] : memref<1x8x32xf32, #tpu.memory_space<vmem>>, vector<1x8x8xf32>
    %64 = vector.shape_cast %63 : vector<1x8x8xf32> to vector<8x8xf32>
    %65 = vector.shape_cast %62 : vector<8x8xf32> to vector<1x8x8xf32>
    tpu.vector_store %arg12[%c0_38, %c0_39, %c8], %65 {strides = array<i32>} : memref<1x8x32xf32, #tpu.memory_space<vmem>>, vector<1x8x8xf32>,
    %66 = vector.extract_strided_slice %11 {offsets = [0, 16], sizes = [8, 8], strides = [1, 1]} : vector<8x32xf32> to vector<8x8xf32>
    %c2 = arith.constant 2 : index
    %c0_40 = arith.constant 0 : index
    %c0_41 = arith.constant 0 : index
    %67 = vector.load %arg13[%c2, %c0_40, %c0_41] : memref<4x8x8xf32, #tpu.memory_space<vmem>>, vector<1x8x8xf32>
    %68 = vector.shape_cast %67 : vector<1x8x8xf32> to vector<8x8xf32>
    %c2_42 = arith.constant 2 : index
    %c0_43 = arith.constant 0 : index
    %c0_44 = arith.constant 0 : index
    %69 = vector.load %arg14[%c2_42, %c0_43, %c0_44] : memref<4x8x8xf32, #tpu.memory_space<vmem>>, vector<1x8x8xf32>
    %70 = vector.shape_cast %69 : vector<1x8x8xf32> to vector<8x8xf32>
    %cst_45 = arith.constant dense<0.000000e+00> : vector<8x8xf32>
    %71 = tpu.matmul %66, %68, %cst_45 {dimension_numbers = #tpu.dot_dimension_numbers<[1], [1], [0], [0], [0, 0, 1, 0], [], []>} : vector<8x8xf32>, vector<8x8xf32>, vector<8x8xf32> -> vector<8x8xf32>
    %cst_46 = arith.constant -1.000000e+09 : f32
    %72 = vector.shape_cast %15 : vector<1x8xi1> to vector<1x8xi1>
    %73 = vector.broadcast %72 : vector<1x8xi1> to vector<8x8xi1>
    %74 = vector.broadcast %cst_46 : f32 to vector<8x8xf32>
    %75 = arith.select %73, %74, %71 : vector<8x8xi1>, vector<8x8xf32>
    %cst_47 = arith.constant dense<0xFF800000> : vector<8xf32>
    %76 = vector.multi_reduction <maximumf>, %75, %cst_47 [1] : vector<8x8xf32> to vector<8xf32>
    %77 = vector.shape_cast %76 : vector<8xf32> to vector<8x1xf32>
    %78 = vector.broadcast %77 : vector<8x1xf32> to vector<8x8xf32>
    %79 = arith.subf %75, %78 : vector<8x8xf32>
    %80 = math.exp %79 : vector<8x8xf32>
    %cst_48 = arith.constant dense<0.000000e+00> : vector<8xf32>
    %81 = vector.multi_reduction <add>, %80, %cst_48 [1] : vector<8x8xf32> to vector<8xf32>
    %82 = vector.shape_cast %81 : vector<8xf32> to vector<8x1xf32>
    %cst_49 = arith.constant 1.000000e+00 : f32
    %83 = vector.broadcast %cst_49 : f32 to vector<8x1xf32>
    %84 = arith.divf %83, %82 : vector<8x1xf32>
    %cst_50 = arith.constant dense<0.000000e+00> : vector<8x8xf32>
    %85 = tpu.matmul %80, %70, %cst_50 {dimension_numbers = #tpu.dot_dimension_numbers<[1], [0], [0], [1], [0, 0, 1, 1], [], []>} : vector<8x8xf32>, vector<8x8xf32>, vector<8x8xf32> -> vector<8x8xf32>
    %86 = vector.broadcast %84 : vector<8x1xf32> to vector<8x8xf32>
    %87 = arith.mulf %85, %86 : vector<8x8xf32>
    %c0_51 = arith.constant 0 : index
    %c0_52 = arith.constant 0 : index
    %c16 = arith.constant 16 : index
    %88 = vector.load %arg12[%c0_51, %c0_52, %c16] : memref<1x8x32xf32, #tpu.memory_space<vmem>>, vector<1x8x8xf32>
    %89 = vector.shape_cast %88 : vector<1x8x8xf32> to vector<8x8xf32>
    %90 = vector.shape_cast %87 : vector<8x8xf32> to vector<1x8x8xf32>
    tpu.vector_store %arg12[%c0_51, %c0_52, %c16], %90 {strides = array<i32>} : memref<1x8x32xf32, #tpu.memory_space<vmem>>, vector<1x8x8xf32>,
    %91 = vector.extract_strided_slice %11 {offsets = [0, 24], sizes = [8, 8], strides = [1, 1]} : vector<8x32xf32> to vector<8x8xf32>
    %c3 = arith.constant 3 : index
    %c0_53 = arith.constant 0 : index
    %c0_54 = arith.constant 0 : index
    %92 = vector.load %arg13[%c3, %c0_53, %c0_54] : memref<4x8x8xf32, #tpu.memory_space<vmem>>, vector<1x8x8xf32>
    %93 = vector.shape_cast %92 : vector<1x8x8xf32> to vector<8x8xf32>
    %c3_55 = arith.constant 3 : index
    %c0_56 = arith.constant 0 : index
    %c0_57 = arith.constant 0 : index
    %94 = vector.load %arg14[%c3_55, %c0_56, %c0_57] : memref<4x8x8xf32, #tpu.memory_space<vmem>>, vector<1x8x8xf32>
    %95 = vector.shape_cast %94 : vector<1x8x8xf32> to vector<8x8xf32>
    %cst_58 = arith.constant dense<0.000000e+00> : vector<8x8xf32>
    %96 = tpu.matmul %91, %93, %cst_58 {dimension_numbers = #tpu.dot_dimension_numbers<[1], [1], [0], [0], [0, 0, 1, 0], [], []>} : vector<8x8xf32>, vector<8x8xf32>, vector<8x8xf32> -> vector<8x8xf32>
    %cst_59 = arith.constant -1.000000e+09 : f32
    %97 = vector.shape_cast %15 : vector<1x8xi1> to vector<1x8xi1>
    %98 = vector.broadcast %97 : vector<1x8xi1> to vector<8x8xi1>
    %99 = vector.broadcast %cst_59 : f32 to vector<8x8xf32>
    %100 = arith.select %98, %99, %96 : vector<8x8xi1>, vector<8x8xf32>
    %cst_60 = arith.constant dense<0xFF800000> : vector<8xf32>
    %101 = vector.multi_reduction <maximumf>, %100, %cst_60 [1] : vector<8x8xf32> to vector<8xf32>
    %102 = vector.shape_cast %101 : vector<8xf32> to vector<8x1xf32>
    %103 = vector.broadcast %102 : vector<8x1xf32> to vector<8x8xf32>
    %104 = arith.subf %100, %103 : vector<8x8xf32>
    %105 = math.exp %104 : vector<8x8xf32>
    %cst_61 = arith.constant dense<0.000000e+00> : vector<8xf32>
    %106 = vector.multi_reduction <add>, %105, %cst_61 [1] : vector<8x8xf32> to vector<8xf32>
    %107 = vector.shape_cast %106 : vector<8xf32> to vector<8x1xf32>
    %cst_62 = arith.constant 1.000000e+00 : f32
    %108 = vector.broadcast %cst_62 : f32 to vector<8x1xf32>
    %109 = arith.divf %108, %107 : vector<8x1xf32>
    %cst_63 = arith.constant dense<0.000000e+00> : vector<8x8xf32>
    %110 = tpu.matmul %105, %95, %cst_63 {dimension_numbers = #tpu.dot_dimension_numbers<[1], [0], [0], [1], [0, 0, 1, 1], [], []>} : vector<8x8xf32>, vector<8x8xf32>, vector<8x8xf32> -> vector<8x8xf32>
    %111 = vector.broadcast %109 : vector<8x1xf32> to vector<8x8xf32>
    %112 = arith.mulf %110, %111 : vector<8x8xf32>
    %c0_64 = arith.constant 0 : index
    %c0_65 = arith.constant 0 : index
    %c24 = arith.constant 24 : index
    %113 = vector.load %arg12[%c0_64, %c0_65, %c24] : memref<1x8x32xf32, #tpu.memory_space<vmem>>, vector<1x8x8xf32>
    %114 = vector.shape_cast %113 : vector<1x8x8xf32> to vector<8x8xf32>
    %115 = vector.shape_cast %112 : vector<8x8xf32> to vector<1x8x8xf32>
    tpu.vector_store %arg12[%c0_64, %c0_65, %c24], %115 {strides = array<i32>} : memref<1x8x32xf32, #tpu.memory_space<vmem>>, vector<1x8x8xf32>,
    return
  }
  func.func @transform_0(%arg0: i32, %arg1: i32) -> (i32, i32, i32) {
    %c0_i32 = arith.constant 0 : i32
    %c0_i32_0 = arith.constant 0 : i32
    %c0_i32_1 = arith.constant 0 : i32
    return %arg0, %c0_i32, %c0_i32_0 : i32, i32, i32
  }
  func.func @transform_1(%arg0: i32, %arg1: i32) -> (i32, i32, i32) {
    %c0_i32 = arith.constant 0 : i32
    %c0_i32_0 = arith.constant 0 : i32
    %c0_i32_1 = arith.constant 0 : i32
    return %arg0, %c0_i32, %c0_i32_0 : i32, i32, i32
  }
  func.func @transform_2(%arg0: i32, %arg1: i32) -> (i32, i32, i32) {
    %c0_i32 = arith.constant 0 : i32
    %c0_i32_0 = arith.constant 0 : i32
    return %arg0, %arg1, %c0_i32 : i32, i32, i32
  }
  func.func @transform_3(%arg0: i32, %arg1: i32) -> (i32, i32, i32) {
    %c0_i32 = arith.constant 0 : i32
    %c0_i32_0 = arith.constant 0 : i32
    %c0_i32_1 = arith.constant 0 : i32
    return %arg0, %c0_i32, %c0_i32_0 : i32, i32, i32
  }
  func.func @transform_4(%arg0: i32, %arg1: i32) -> (i32, i32) {
    %c0_i32 = arith.constant 0 : i32
    %c0_i32_0 = arith.constant 0 : i32
    %c0_i32_1 = arith.constant 0 : i32
    return %c0_i32, %c0_i32_0 : i32, i32
  }
  func.func @transform_5(%arg0: i32, %arg1: i32) -> (i32, i32) {
    %c0_i32 = arith.constant 0 : i32
    %c0_i32_0 = arith.constant 0 : i32
    %c0_i32_1 = arith.constant 0 : i32
    return %c0_i32, %c0_i32_0 : i32, i32
  }
  func.func @transform_6(%arg0: i32, %arg1: i32) -> (i32, i32) {
    %c0_i32 = arith.constant 0 : i32
    %c0_i32_0 = arith.constant 0 : i32
    %c0_i32_1 = arith.constant 0 : i32
    return %c0_i32, %c0_i32_0 : i32, i32
  }
  func.func @transform_7(%arg0: i32, %arg1: i32) -> (i32, i32) {
    %c0_i32 = arith.constant 0 : i32
    %c0_i32_0 = arith.constant 0 : i32
    %c0_i32_1 = arith.constant 0 : i32
    return %c0_i32, %c0_i32_0 : i32, i32
  }
  func.func @transform_8(%arg0: i32, %arg1: i32) -> (i32, i32) {
    %c0_i32 = arith.constant 0 : i32
    %c0_i32_0 = arith.constant 0 : i32
    %c0_i32_1 = arith.constant 0 : i32
    return %c0_i32, %c0_i32_0 : i32, i32
  }
  func.func @transform_9(%arg0: i32, %arg1: i32) -> (i32, i32) {
    %c0_i32 = arith.constant 0 : i32
    %c0_i32_0 = arith.constant 0 : i32
    %c0_i32_1 = arith.constant 0 : i32
    return %c0_i32, %c0_i32_0 : i32, i32
  }
  func.func @transform_10(%arg0: i32, %arg1: i32) -> (i32, i32, i32) {
    %c0_i32 = arith.constant 0 : i32
    %c0_i32_0 = arith.constant 0 : i32
    return %arg0, %arg1, %c0_i32 : i32, i32, i32
  }
}

</mosaic_0001>

<bundles_post_ra>
// kernel: tpu_custom_call.1
= control target key start
LH: loop header
LB: loop body
LE: loop exit
PB: predicated region body
PF: predicated region fallthrough
CT: control target
= control target key end

     0   :  { %s2770_s0 = inlined_call_operand.hbm [shape: f32[2,8,32], index: 0, kind: input, shape index: {}]   ;;  %s2771_s1 = inlined_call_operand.hbm [shape: f32[2,8,32], index: 1, kind: input, shape index: {}]   ;;  %s2772_s2 = inlined_call_operand.hbm [shape: f32[2,8,32], index: 2, kind: input, shape index: {}]   ;;  %s2773_s3 = inlined_call_operand.vmem [shape: s32[2,1,8], index: 3, kind: input, shape index: {}]   ;;  %s2774_s4 = inlined_call_operand.hbm [shape: f32[32,32], index: 4, kind: input, shape index: {}]   ;;  %s2775_s5 = inlined_call_operand.vmem [shape: f32[1,32], index: 5, kind: input, shape index: {}]   ;;  %s2776_s6 = inlined_call_operand.hbm [shape: f32[32,32], index: 6, kind: input, shape index: {}]   ;;  %s2777_s7 = inlined_call_operand.vmem [shape: f32[1,32], index: 7, kind: input, shape index: {}]   ;;  %s2778_s8 = inlined_call_operand.hbm [shape: f32[32,32], index: 8, kind: input, shape index: {}]   ;;  %s2779_s9 = inlined_call_operand.vmem [shape: f32[1,32], index: 9, kind: input, shape index: {}]   ;;  %s2780_s10 = inlined_call_operand.hbm [shape: f32[2,8,32], index: 10, kind: output, shape index: {}]  }
   0x1   :  { %2808 = sst [smem:[#allocation29_spill]] %s2771_s1 }
   0x2   :  { %2809 = sst [smem:[#allocation30_spill]] %s2773_s3 }
   0x3   :  { %2810 = sst [smem:[#allocation31_spill]] %s2774_s4 }
   0x4   :  { %2811 = sst [smem:[#allocation32_spill]] %s2775_s5 }
   0x5   :  { %2812 = sst [smem:[#allocation33_spill]] %s2779_s9 }
   0x6   :  { %2813 = sst [smem:[#allocation34_spill]] %s2780_s10 }
   0x7   :  { %15 = vsyncpa [#allocation5], 0 }
   0x8   :  { %17 = vsyncpa [#allocation5 + $0x1], 0 }
   0x9   :  { %18 = vsyncpa [#allocation8], 0 }
   0xa   :  { %20 = vsyncpa [#allocation8 + $0x1], 0 }
   0xb   :  { %21 = vsyncpa [#allocation11], 0 }
   0xc   :  { %22 = vsyncpa [#allocation14], 0 }
   0xd   :  { %23 = vsyncpa [#allocation6], 0 }
   0xe   :  { %25 = vsyncpa [#allocation6 + $0x1], 0  ;;  %s2327_s13 = smov 0   ;;  %s2329_s14 = smov 0  }
   0xf   :  { %s2331_s15 = smov 0   ;;  %s2333_s16 = smov 0  }
  0x10   :  { %s2335_s17 = smov 0   ;;  %s2337_s18 = smov 0  }
  0x11 LB: > { %2814 = sst [smem:[#allocation21_spill]] %s2231_s13  ;;  %s2358_s19 = sadd.s32 4294967295, %s2251_s18   ;;  %s2251_s18 = sphi %s2337_s18, %s31_s18   ;;  %s2247_s17 = sphi %s2335_s17, %s2861_s17   ;;  %s2243_s16 = sphi %s2333_s16, %s2860_s16   ;;  %s2239_s15 = sphi %s2331_s15, %s2864_s15   ;;  %s2235_s14 = sphi %s2329_s14, %s2863_s14   ;;  %s2231_s13 = sphi %s2327_s13, %s2862_s13  }
  0x12   : > { %2815 = sst [smem:[#allocation22_spill]] %s2243_s16  ;;  %s1688_s20 = sadd.s32 4294967294, %s2251_s18  }
  0x13   : > { %2816 = sst [smem:[#allocation23_spill]] %s2247_s17  ;;  %p63_p0 = scmp.ne.s32.totalorder %s2235_s14, %s2231_s13 }
  0x14   : > { %2817 = sst [smem:[#allocation24_spill]] %s2251_s18  ;;  %p2782_p1 = scmp.eq.s32.totalorder %s2358_s19, 0 }
  0x15   : > { %p301_p3 = scmp.eq.s32.totalorder %s1688_s20, 1  ;;  %p1689_p5 = scmp.ge.s32.totalorder %s2251_s18, 1 }
  0x16   : > { %p2367_p4 = por %p2782_p1, %p63_p0  ;;  %p308_p7 = scmp.lt.s32.totalorder %s2251_s18, 3 }
  0x17   : > { %p2372_p6 = por %p301_p3, %p63_p0  ;;  %s2253_s24 = smov [#allocation10]  }
  0x18   : > { %s2818_s21 = scalar_select %p2367_p4, 1, 0 }
  0x19   : > { %s2819_s22 = scalar_select %p2372_p6, 1, 0 }
  0x1a   : > { %p2377_p8 = pnand %p1689_p5, %p308_p7  ;;  %s320_s25 = sshll.u32 %s2253_s24, 4  ;;  %s321_s25 = int_to_ptr.vmem [resolvable:$true] %s320_s25 }
  0x1b   : > { %2820 = sst [smem:[#allocation25_spill]] %s2819_s22  ;;  %s43_s27 = sadd.s32 1, %s2247_s17 }
  0x1c   : > { %s2821_s23 = scalar_select %p2377_p8, 1, 0 }
  0x1d   : > { %p1872_p9 = pneg %p2377_p8  ;;  %s2823_s4 = sld [smem:[#allocation31_spill]] }
  0x1f   : > { %p2386_p11 = pnand %p1872_p9, %p2782_p1 }
  0x21   : > { %s2822_s26 = scalar_select %p2386_p11, 1, 0 }
  0x22   : > { %p2399_p13 = pneg %p2386_p11 }
  0x23   : > { %s1983_s30 = scalar_lea.hbm %s2823_s4, 512 }
  0x24   : > { %p1984_p12 = scmp.ne.s32.totalorder %s2823_s4, %s1983_s30  ;;  %p1990_p5 = scmp.lt.u32.totalorder %s1983_s30, %s2823_s4 }
  0x25   : > { %s2824_s20 = scalar_select %p2399_p13, 1, 0 }
  0x26   : > { %p1986_p0 = pnand %p2399_p13, %p1984_p12 }
  0x28   : > { %p1987_p3 = pneg %p1986_p0 }
  0x2a   : > { %p1992_p7 = pnand %p1990_p5, %p1987_p3 }
  0x2c   : > { %1995 = shalt.err (!%p1992_p7)
}
  0x2d   : > { %s1996_s28 = scalar_lea.vmem %s321_s25, 512  ;;  %p2004_p2 = scmp.lt.s32.totalorder %s321_s25, %s321_s25 }
  0x2e   : > { %p1997_p9 = scmp.ne.s32.totalorder %s321_s25, %s1996_s28  ;;  %p2005_p6 = scmp.lt.s32.totalorder %s1996_s28, %s1996_s28 }
  0x30   : > { %p1999_p10 = pnand %p1997_p9, %p2399_p13  ;;  %p2006_p4 = por %p2005_p6, %p2004_p2 }
  0x32   : > { %p2000_p1 = pneg %p1999_p10 }
  0x34   : > { %p2007_p8 = pnand %p2006_p4, %p2000_p1 }
  0x36   : > { %2010 = shalt.err (!%p2007_p8)
}
  0x37   : > { %s2786_s29 = smov 128   ;;  %s2788_s22 = smov 8  }
  0x38   : > { %1875 = dma.hbm_to_vmem [thread:$0]  (!%p2386_p11), %s2823_s4, 512, %s321_s25, [#allocation11], %s2786_s29, %s2786_s29, %s2788_s22  }
  0x39   : > { %p45_p1 = scmp.ge.s32.totalorder %s43_s27, 2  ;;  %s50_s12 = sadd.s32 1, %s2239_s15 }
  0x3a   : > { %p57_p2 = scmp.ne.s32.totalorder %s2239_s15, %s2235_s14  ;;  %p58_p4 = scmp.eq.s32.totalorder %s2251_s18, 0 }
  0x3b   : > { %s2866_s27 = smov (%p45_p1, %s43_s27), 0  ;;  %p2826_p8 = scmp.eq.s32.totalorder %s2358_s19, 1 }
  0x3c   : > { %2825 = sst [smem:[#allocation26_spill]] %s2866_s27  ;;  %p59_p6 = por %p58_p4, %p57_p2 }
  0x3d   : > { %p2426_p10 = por %p2826_p8, %p57_p2  ;;  %s47_s28 = ssub.s32 %s2247_s17, %s2866_s27 }
  0x3e   : > { %p1899_p12 = scmp.lt.s32.totalorder %s2251_s18, 2  ;;  %p48_p0 = scmp.eq.s32.totalorder %s47_s28, 0 }
  0x3f   : > { %s2827_s24 = scalar_select %p2426_p10, 1, 0 }
  0x40   : > { %s2791_s13 = sand.u32 1, %s2239_s15   ;;  %s2439_s30 = sshll.u32 %s2247_s17, 7 }
  0x41   : > { %2828 = sst [smem:[#allocation27_spill]] %s2827_s24  ;;  %s2436_s25 = sshll.u32 %s2791_s13, 3 }
  0x42   : > { %s2442_s11 = scalar_select %p48_p0, %s2239_s15, %s50_s12  }
  0x43   : > { %p2444_p3 = pnand %p1899_p12, %p59_p6  ;;  %s387_s22 = sand.u32 1, %s2251_s18  }
  0x44   : > { %2829 = sst [smem:[#allocation28_spill]] %s2442_s11  ;;  %s391_s13 = scalar_lea.vmem [#allocation7], %s2436_s25 }
  0x45   : > { %s2830_s29 = scalar_select %p2444_p3, 1, 0 }
  0x46   : > { %s2831_s1 = sld [smem:[#allocation29_spill]]  ;;  %s398_s17 = sshll.u32 %s391_s13, 4  ;;  %s2456_s17 = int_to_ptr.vmem [resolvable:$true] %s398_s17 }
  0x47   : > { %s2256_s12 = smov [#allocation12]   ;;  %s2460_s10 = scalar_lea.sflag [#allocation8], %s387_s22 }
  0x48   : > { %s2458_s11 = sshll.u32 %s2256_s12, 4  ;;  %p2466_p7 = pneg %p2444_p3  ;;  %s337_s11 = int_to_ptr.vmem [resolvable:$true] %s2458_s11 }
  0x4a   : > { %s2832_s4 = scalar_select %p2466_p7, 1, 0 }
  0x4c   : > { %s2453_s28 = scalar_lea.hbm %s2831_s1, %s2439_s30  ;;  %s2016_s18 = scalar_lea.hbm %s2831_s1, 256 }
  0x4d   : > { %s2011_s24 = scalar_lea.hbm %s2453_s28, 128  ;;  %p2017_p2 = scmp.lt.u32.totalorder %s2453_s28, %s2831_s1 }
  0x4e   : > { %p2012_p5 = scmp.ne.s32.totalorder %s2453_s28, %s2011_s24  ;;  %p2018_p4 = scmp.lt.u32.totalorder %s2016_s18, %s2011_s24 }
  0x4f   : > { %p2020_p8 = scmp.lt.u32.totalorder %s2011_s24, %s2453_s28 }
  0x50   : > { %p2014_p9 = pnand %p2466_p7, %p2012_p5  ;;  %p2019_p6 = por %p2018_p4, %p2017_p2 }
  0x52   : > { %p2015_p1 = pneg %p2014_p9  ;;  %p2021_p12 = por %p2020_p8, %p2019_p6 }
  0x54   : > { %p2022_p0 = pnand %p2021_p12, %p2015_p1 }
  0x56   : > { %2025 = shalt.err (!%p2022_p0)
}
  0x57   : > { %s2026_s22 = scalar_lea.vmem %s2456_s17, 128  ;;  %s2257_s27 = smov [#allocation7]  }
  0x58   : > { %p2027_p5 = scmp.ne.s32.totalorder %s2456_s17, %s2026_s22  ;;  %s2031_s13 = sshll.u32 %s2257_s27, 4  ;;  %s2032_s13 = int_to_ptr.vmem [resolvable:$false] %s2031_s13 }
  0x59   : > { %s2033_s3 = scalar_lea.vmem %s2032_s13, 256  ;;  %p2034_p11 = scmp.lt.s32.totalorder %s2456_s17, %s2032_s13 }
  0x5a   : > { %p2029_p9 = pnand %p2027_p5, %p2466_p7  ;;  %p2035_p13 = scmp.lt.s32.totalorder %s2033_s3, %s2026_s22 }
  0x5c   : > { %p2030_p10 = pneg %p2029_p9  ;;  %p2036_p2 = por %p2035_p13, %p2034_p11 }
  0x5e   : > { %p2037_p4 = pnand %p2036_p2, %p2030_p10 }
  0x60   : > { %2040 = shalt.err (!%p2037_p4)
}
  0x61   : > { %1888 = dma.hbm_to_vmem [thread:$0]  (!%p2444_p3), %s2453_s28, 128, %s2456_s17, %s2460_s10  }
  0x62   : > { %s2041_s12 = scalar_lea.hbm %s2776_s6, 512  ;;  %p2833_p11 = scmp.ne.s32.totalorder %s2824_s20, 0 }
  0x63   : > { %p2042_p1 = scmp.ne.s32.totalorder %s2776_s6, %s2041_s12  ;;  %p2048_p6 = scmp.lt.u32.totalorder %s2041_s12, %s2776_s6 }
  0x65   : > { %p2044_p13 = pnand %p2042_p1, %p2833_p11 }
  0x67   : > { %p2045_p10 = pneg %p2044_p13 }
  0x69   : > { %p2050_p8 = pnand %p2048_p6, %p2045_p10 }
  0x6b   : > { %2053 = shalt.err (!%p2050_p8)
}
  0x6c   : > { %s2054_s3 = scalar_lea.vmem %s337_s11, 512  ;;  %p2062_p9 = scmp.lt.s32.totalorder %s337_s11, %s337_s11 }
  0x6d   : > { %p2055_p12 = scmp.ne.s32.totalorder %s337_s11, %s2054_s3  ;;  %p2063_p2 = scmp.lt.s32.totalorder %s2054_s3, %s2054_s3 }
  0x6f   : > { %p2057_p0 = pnand %p2055_p12, %p2833_p11  ;;  %p2064_p4 = por %p2063_p2, %p2062_p9 }
  0x71   : > { %p2058_p5 = pneg %p2057_p0 }
  0x73   : > { %p2065_p3 = pnand %p2064_p4, %p2058_p5 }
  0x75   : > { %2068 = shalt.err (!%p2065_p3)
}
  0x76   : > { %p2834_p1 = scmp.ne.s32.totalorder %s2822_s26, 0  ;;  %s2835_s1 = smov 8  }
  0x77   : > { %s2836_s17 = smov 128   ;;  %s2258_s24 = smov [#allocation13]  }
  0x78   : > { %1878 = dma.hbm_to_vmem [thread:$0]  (!%p2834_p1), %s2776_s6, 512, %s337_s11, [#allocation11], %s2836_s17, %s2836_s17, %s2835_s1  }
  0x79   : > { %s352_s12 = sshll.u32 %s2258_s24, 4  ;;  %s2069_s13 = scalar_lea.hbm %s2778_s8, 512  ;;  %s353_s12 = int_to_ptr.vmem [resolvable:$true] %s352_s12 }
  0x7a   : > { %p2070_p3 = scmp.ne.s32.totalorder %s2778_s8, %s2069_s13  ;;  %p2076_p6 = scmp.lt.u32.totalorder %s2069_s13, %s2778_s8 }
  0x7c   : > { %p2072_p13 = pnand %p2070_p3, %p2833_p11 }
  0x7e   : > { %p2073_p10 = pneg %p2072_p13 }
  0x80   : > { %p2078_p8 = pnand %p2076_p6, %p2073_p10 }
  0x82   : > { %2081 = shalt.err (!%p2078_p8)
}
  0x83   : > { %s2082_s11 = scalar_lea.vmem %s353_s12, 512  ;;  %p2090_p9 = scmp.lt.s32.totalorder %s353_s12, %s353_s12 }
  0x84   : > { %p2083_p12 = scmp.ne.s32.totalorder %s353_s12, %s2082_s11  ;;  %p2091_p2 = scmp.lt.s32.totalorder %s2082_s11, %s2082_s11 }
  0x86   : > { %p2085_p0 = pnand %p2083_p12, %p2833_p11  ;;  %p2092_p4 = por %p2091_p2, %p2090_p9 }
  0x88   : > { %p2086_p5 = pneg %p2085_p0 }
  0x8a   : > { %p2093_p7 = pnand %p2092_p4, %p2086_p5 }
  0x8c   : > { %2096 = shalt.err (!%p2093_p7)
}
  0x8d   : > { %1881 = dma.hbm_to_vmem [thread:$0]  (!%p2834_p1), %s2778_s8, 512, %s353_s12, [#allocation14], %s2836_s17, %s2836_s17, %s2835_s1  }
  0x8e   : > { %s2537_s28 = scalar_lea.hbm %s2770_s0, %s2439_s30  ;;  %s373_s26 = scalar_lea.vmem [#allocation4], %s2436_s25 }
  0x8f   : > { %s380_s18 = sshll.u32 %s373_s26, 4  ;;  %s2837_s24 = sand.u32 1, %s2239_s15   ;;  %s381_s18 = int_to_ptr.vmem [resolvable:$true] %s380_s18 }
  0x90   : > { %s370_s27 = scalar_lea.sflag [#allocation5], %s2837_s24  ;;  %s2097_s22 = scalar_lea.hbm %s2537_s28, 128 }
  0x91   : > { %p2098_p7 = scmp.ne.s32.totalorder %s2537_s28, %s2097_s22  ;;  %p2838_p11 = scmp.ne.s32.totalorder %s2832_s4, 0 }
  0x92   : > { %s2102_s12 = scalar_lea.hbm %s2770_s0, 256  ;;  %p2103_p1 = scmp.lt.u32.totalorder %s2537_s28, %s2770_s0 }
  0x93   : > { %p2100_p3 = pnand %p2098_p7, %p2838_p11  ;;  %p2104_p10 = scmp.lt.u32.totalorder %s2102_s12, %s2097_s22 }
  0x94   : > { %p2106_p8 = scmp.lt.u32.totalorder %s2097_s22, %s2537_s28 }
  0x95   : > { %p2101_p13 = pneg %p2100_p3  ;;  %p2105_p6 = por %p2104_p10, %p2103_p1 }
  0x97   : > { %p2107_p12 = por %p2106_p8, %p2105_p6 }
  0x99   : > { %p2108_p0 = pnand %p2107_p12, %p2101_p13 }
  0x9b   : > { %2111 = shalt.err (!%p2108_p0)
}
  0x9c   : > { %s2112_s11 = scalar_lea.vmem %s381_s18, 128  ;;  %s2259_s5 = smov [#allocation4]  }
  0x9d   : > { %p2113_p5 = scmp.ne.s32.totalorder %s381_s18, %s2112_s11  ;;  %s2117_s9 = sshll.u32 %s2259_s5, 4  ;;  %s2118_s9 = int_to_ptr.vmem [resolvable:$false] %s2117_s9 }
  0x9e   : > { %s2119_s16 = scalar_lea.vmem %s2118_s9, 256  ;;  %p2120_p4 = scmp.lt.s32.totalorder %s381_s18, %s2118_s9 }
  0x9f   : > { %p2115_p9 = pnand %p2113_p5, %p2838_p11  ;;  %p2121_p7 = scmp.lt.s32.totalorder %s2119_s16, %s2112_s11 }
  0xa1   : > { %p2116_p2 = pneg %p2115_p9  ;;  %p2122_p3 = por %p2121_p7, %p2120_p4 }
  0xa3   : > { %p2123_p1 = pnand %p2122_p3, %p2116_p2 }
  0xa5   : > { %2126 = shalt.err (!%p2123_p1)
}
  0xa6   : > { %p2839_p10 = scmp.ne.s32.totalorder %s2830_s29, 0  ;;  %s2563_s24 = scalar_lea.hbm %s2772_s2, %s2439_s30 }
  0xa7   : > { %s409_s22 = scalar_lea.vmem [#allocation9], %s2436_s25  ;;  %s2127_s17 = scalar_lea.hbm %s2563_s24, 128 }
  0xa8   : > { %1885 = dma.hbm_to_vmem [thread:$0]  (!%p2839_p10), %s2537_s28, 128, %s381_s18, %s370_s27  }
  0xa9   : > { %s417_s1 = sshll.u32 %s409_s22, 4  ;;  %p2128_p13 = scmp.ne.s32.totalorder %s2563_s24, %s2127_s17  ;;  %s418_s1 = int_to_ptr.vmem [resolvable:$true] %s417_s1 }
  0xaa   : > { %s2132_s28 = scalar_lea.hbm %s2772_s2, 256  ;;  %p2133_p12 = scmp.lt.u32.totalorder %s2563_s24, %s2772_s2 }
  0xab   : > { %p2130_p6 = pnand %p2128_p13, %p2838_p11  ;;  %p2134_p0 = scmp.lt.u32.totalorder %s2132_s28, %s2127_s17 }
  0xac   : > { %p2136_p9 = scmp.lt.u32.totalorder %s2127_s17, %s2563_s24 }
  0xad   : > { %p2131_p8 = pneg %p2130_p6  ;;  %p2135_p5 = por %p2134_p0, %p2133_p12 }
  0xaf   : > { %p2137_p2 = por %p2136_p9, %p2135_p5 }
  0xb1   : > { %p2138_p4 = pnand %p2137_p2, %p2131_p8 }
  0xb3   : > { %2141 = shalt.err (!%p2138_p4)
}
  0xb4   : > { %s2142_s25 = scalar_lea.vmem %s418_s1, 128  ;;  %s2260_s30 = smov [#allocation9]  }
  0xb5   : > { %p2143_p7 = scmp.ne.s32.totalorder %s418_s1, %s2142_s25  ;;  %s2147_s3 = sshll.u32 %s2260_s30, 4  ;;  %s2148_s3 = int_to_ptr.vmem [resolvable:$false] %s2147_s3 }
  0xb6   : > { %s2149_s11 = scalar_lea.vmem %s2148_s3, 256  ;;  %p2150_p13 = scmp.lt.s32.totalorder %s418_s1, %s2148_s3 }
  0xb7   : > { %p2145_p3 = pnand %p2143_p7, %p2838_p11  ;;  %p2151_p6 = scmp.lt.s32.totalorder %s2149_s11, %s2142_s25 }
  0xb9   : > { %p2146_p1 = pneg %p2145_p3  ;;  %p2152_p10 = por %p2151_p6, %p2150_p13 }
  0xbb   : > { %p2153_p0 = pnand %p2152_p10, %p2146_p1 }
  0xbd   : > { %2156 = shalt.err (!%p2153_p0)
}
  0xbe   : > { %p2840_p12 = scmp.ne.s32.totalorder %s2830_s29, 0  ;;  %p2841_p8 = scmp.ne.s32.totalorder %s2821_s23, 0 }
  0xbf   : > { %s2587_s4 = sand.u32 (!%p2841_p8), 1, %s2235_s14   ;;  %p2842_p11 = scmp.ne.s32.totalorder (!%p2841_p8), %s2818_s21, 0 }
  0xc0   : > { %1891 = dma.hbm_to_vmem [thread:$0]  (!%p2840_p12), %s2563_s24, 128, %s418_s1, %s2460_s10  }
  0xc1   : > { %432 = sbr.rel (%p2841_p8) target bundleno = 1287 (0x507), region = 60  ;;  %s2590_s5 = sshll.u32 (!%p2841_p8), %s2587_s4, 3 }
  0xc2   : > { %s435_s9 = scalar_lea.sflag (!%p2841_p8), [#allocation5], %s2587_s4  ;;  %s438_s16 = scalar_lea.vmem (!%p2841_p8), [#allocation4], %s2590_s5 }
  0xc8   : > { %2210 = dma.done.wait (%p2842_p11), %s435_s9, 128  }
  0xc9   : > { %2212 = vsyncadd (%p2842_p11), %s435_s9, 4294967168  ;;  %s443_s10 = sand.u32 1, %s2358_s19   ;;  %s447_s29 = scalar_lea.vmem [#allocation7], %s2590_s5 }
  0xca   : > { %s444_s23 = scalar_lea.sflag [#allocation8], %s443_s10 }
  0xcb   : > { %2214 = dma.done.wait (%p2842_p11), %s444_s23, 256  }
  0xcc   : > { %2216 = vsyncadd (%p2842_p11), %s444_s23, 4294967040  ;;  %s456_s20 = scalar_lea.vmem [#allocation9], %s2590_s5  ;;  %p2843_p10 = scmp.eq.s32.totalorder %s2358_s19, 0 }
  0xce   : > { %2218 = dma.done.wait (%p2843_p10), [#allocation11], 1024   ;;  %p2844_p5 = pmov %p2843_p10 }
  0xd0   : > { %2220 = vsyncadd (%p2844_p5), [#allocation11], 4294966272  ;;  %p2845_p9 = pmov %p2844_p5 }
  0xd1   : > { %p2846_p2 = pmov %p2844_p5 }
  0xd2   : > { %2222 = dma.done.wait (%p2845_p9), [#allocation14], 512  }
  0xd3   : > { %2224 = vsyncadd (%p2846_p2), [#allocation14], 4294966784  ;;  %v2261_v0 = vmov 0.0|0.0   ;;  %vm2262_vm0 = vmmov 0   ;;  %v2263_v1 = vmov 0.0   ;;  %v526_v2 = vld [vmem:[#allocation12] sm:$0xff]  ;;  %v900_v47 = vlaneseq }
  0xd4   : > { %1834 = vmatprep.subr.bf16.mxu0 %v2261_v0  ;;  %1769 = vmatprep.mubr.msk.f32.mxu0 %vm2262_vm0, %v2263_v1  ;;  %v527_v3 = vld [vmem:[#allocation12 + $0x8] sm:$0xff]  ;;  %v528_v4 = vld [vmem:[#allocation12 + $0x10] sm:$0xff]  ;;  %v529_v6 = vld [vmem:[#allocation12 + $0x18] sm:$0xff]  ;;  %vm537_vm1 = vcmask 261120   ;;  %vm696_vm2 = vcmask 64512   ;;  %s2264_s26 = smov 104  }
  0xd5   : > { %1840 = vmatprep.subr.bf16.mxu1 %v2261_v0  ;;  %1780 = vmatprep.mubr.msk.f32.mxu1 %vm2262_vm0, %v2263_v1  ;;  %v1835_v5 = vpack.c.bf16 %v527_v3, %v526_v2  ;;  %v1838_v7 = vpack.c.bf16 %v529_v6, %v528_v4  ;;  %v612_v8 = vld [vmem:[#allocation10] sm:$0xff]  ;;  %v613_v9 = vld [vmem:[#allocation10 + $0x8] sm:$0xff]  ;;  %v734_v15 = vld [vmem:[#allocation13 + $0x10] sm:$0xff]  ;;  %s2265_s24 = smov 120   ;;  %s2847_s17 = sld [smem:[#allocation33_spill]]  ;;  %v901_v49 = vshrl.u32 %v900_v47, 7 }
  0xd6   : > { %v732_v10 = vld [vmem:[#allocation13] sm:$0xff]  ;;  %v733_v11 = vld [vmem:[#allocation13 + $0x8] sm:$0xff]  ;;  %v1841_v12 = vpack.c.bf16 %v613_v9, %v612_v8  ;;  %v735_v16 = vld [vmem:[#allocation13 + $0x18] sm:$0xff]  ;;  %s2266_s12 = smov 112   ;;  %s2848_s18 = sld [smem:[#allocation32_spill]]  ;;  %v2267_v51 = vmov 0  }
  0xd7   : > { %1836 = vmatpush3.bf16.msra.mxu0 %v1835_v5  ;;  %v525_v13 = vld [vmem:[%s447_s29] sm:$0xff]  ;;  %v1847_v14 = vpack.c.bf16 %v733_v11, %v732_v10  ;;  %v1850_v17 = vpack.c.bf16 %v735_v16, %v734_v15  ;;  %v731_v18 = vld [vmem:[%s456_s20] sm:$0xff]  ;;  %s2849_s27 = sld [smem:[#allocation22_spill]]  ;;  %s2850_s11 = sld [smem:[#allocation30_spill]]  ;;  %v902_v50 = vsub.s32 0, %v901_v49  ;;  %vm1163_vm5 = vcmask 130112  }
  0xd8   : > { %1837 = vmatprep.subr.bf16.mxu0 %v2261_v0  ;;  %1842 = vmatpush3.bf16.msra.mxu1 %v1841_v12  ;;  %v614_v19 = vld [vmem:[#allocation10 + $0x10] sm:$0xff]  ;;  %v615_v20 = vld [vmem:[#allocation10 + $0x18] sm:$0xff]  ;;  %s2268_s10 = smov 8   ;;  %s2270_s23 = smov 24   ;;  %vm1336_vm6 = vcmask 195712   ;;  %vm1509_vm7 = vcmask 261312  }
  0xd9   : > { %1843 = vmatprep.subr.bf16.mxu1 %v2261_v0  ;;  %v1844_v21 = vpack.c.bf16 %v615_v20, %v614_v19  ;;  %v611_v22 = vld [vmem:[%s438_s16] sm:$0xff]  ;;  %s2709_s16 = scalar_lea.vmem [#allocation15], %s2590_s5  ;;  %s2269_s5 = smov 16  }
  0xda   : > { %v1708_v23 = vld [vmem:[%s2777_s7] ss:$0 sm:$0xff]  ;;  %s2851_s29 = sld [smem:[#allocation27_spill]]  ;;  %s1526_s19 = sshll.u32 %s2709_s16, 4  ;;  %s2722_s19 = int_to_ptr.vmem [resolvable:$true] %s1526_s19 }
  0xdb   : > { %1839 = vmatpush3.bf16.msra.mxu0 %v1838_v7  ;;  %v1712_v27 = vld [vmem:[%s2847_s17] ss:$0 sm:$0xff]  ;;  %s1512_s1 = scalar_lea.sflag [#allocation6], %s2587_s4  ;;  %s2157_s17 = scalar_lea.vmem %s2722_s19, 128 }
  0xdc   : > { %1846 = vmatprep.subr.bf16.mxu0 %v2261_v0  ;;  %1845 = vmatpush3.bf16.msra.mxu1 %v1844_v21  ;;  %v1710_v33 = vld [vmem:[%s2848_s18] ss:$0 sm:$0xff]  ;;  %p2158_p7 = scmp.ne.s32.totalorder %s2722_s19, %s2157_s17 }
  0xdd   : > { %1794 = vmatprep.subr.mxu1 %v2263_v1  ;;  %p518_p4 = scmp.lt.s32.totalorder %s2849_s27, 1  ;;  %s1727_s20 = sshll.u32 %s2849_s27, 7 }
  0xde   : > { %1770 = vmatmul.mubr.msk.f32.vlgmr.msra.gmra.mrb[0].mxu0 %vm537_vm1, %v525_v13 }
  0xdf   : > { %1848 = vmatpush3.bf16.msra.mxu0 %v1847_v14  ;;  %1791 = vmatprep.mubr.msk.f32.mxu0 %vm2262_vm0, %v2263_v1  ;;  %s519_s25 = scalar_select %p518_p4, %s2849_s27, 1 }
  0xe0   : > { %1849 = vmatprep.subr.bf16.mxu0 %v2261_v0  ;;  %1781 = vmatmul.mubr.msk.f32.vlgmr.msra.gmra.mrb[0].mxu1 %vm537_vm1, %v611_v22  ;;  %p2853_p3 = scmp.ne.s32.totalorder %s2851_s29, 0 }
  0xe1   : > { %1796 = vmatprep.mubr.msk.f32.mxu1 %vm2262_vm0, %v2263_v1  ;;  %s520_s9 = scalar_lea.vmem %s2850_s11, %s519_s25 }
  0xe2   : > { %v818_v48 = vld [vmem:[%s520_s9] sm:$0x1]  ;;  %p2159_p1 = pnand %p2158_p7, %p2853_p3 }
  0xe3   : > { %1851 = vmatpush3.bf16.msra.mxu0 %v1850_v17  ;;  %vm819_vm3 = vcmp.ne.s32.totalorder %v818_v48, 0 }
  0xe4   : > { %1804 = vmatprep.subr.mxu0 %v2263_v1  ;;  %v899_v52 = vsel %vm819_vm3, 1, %v2267_v51  ;;  %p2160_p13 = pneg %p2159_p1 }
  0xe5   : > { %v903_v53 = vrot.slane %v899_v52, %v902_v50 }
  0xe6   : > { %1792 = vmatmul.mubr.msk.f32.vlgmr.msra.gmra.mrb[2].mxu0 %vm537_vm1, %v731_v18 }
  0xe7   : > { %1806 = vmatprep.mubr.msk.f32.mxu0 %vm2262_vm0, %v2263_v1  ;;  %vm904_vm4 = vcmp.eq.s32.totalorder %v903_v53, 1 }
 0x1b1   : > { %v607_v24 = vpop.f32.mrb[0].mxu0 }
 0x1b2   : > { %v608_v25 = vadd.f32 %v1708_v23, %v607_v24  ;;  %v1771_v26 = vpop.f32.mrb[1].mxu0 }
 0x1b3   : > { %v692_v34 = vpop.f32.mrb[0].mxu1 }
 0x1b4   : > { %697 = vst.msk [vmem:[#allocation2] sm:$0xff] %vm696_vm2, %v608_v25  ;;  %721 = vrot.lane.b32.xlu1 %v608_v25, %s2264_s26  ;;  %700 = vrot.lane.b32.xlu0 %v608_v25, %s2265_s24  ;;  %v2651_v35 = vadd.f32 %v1710_v33, %v692_v34  ;;  %v1782_v36 = vpop.f32.mrb[1].mxu1 }
 0x1b6   : > { %698 = vst.msk [vmem:[#allocation3] sm:$0xff] %vm696_vm2, %v2651_v35 }
 0x1b8   : > { %711 = vrot.lane.b32.xlu0 %v608_v25, %s2266_s12 }
 0x1b9   : > { %v813_v28 = vpop.f32.mrb[2].mxu0 }
 0x1ba   : > { %v814_v29 = vadd.f32 %v1712_v27, %v813_v28  ;;  %v1793_v30 = vpop.f32.mrb[3].mxu0 }
 0x1bb   : > { %v820_v31 = vld [vmem:[#allocation2] sm:$0xff] }
 0x1bc   : > { %v817_v32 = vmul.f32 0.35355338, %v814_v29  ;;  %1795 = vmatpush3.xpose.msk.msra.mxu1 %vm696_vm2, %v820_v31 }
 0x1bd   : > { %1799 = vmatprep.subr.mxu1 %v2263_v1  ;;  %v821_v37 = vld [vmem:[#allocation3] sm:$0xff] }
 0x1be   : > { %996 = vrot.lane.b32.xlu1 %v817_v32, %s2265_s24  ;;  %1169 = vrot.lane.b32.xlu0 %v817_v32, %s2266_s12 }
 0x1bf   : > { %1797 = vmatmul.mubr.msk.f32.vlgmr.msra.gmra.mrb[2].mxu1 %vm696_vm2, %v817_v32 }
 0x1c0   : > { %1801 = vmatprep.mubr.msk.f32.mxu1 %vm2262_vm0, %v2263_v1  ;;  %1800 = vmatpush3.msra.mxu1 %v821_v37 }
 0x1c1   : > { %1809 = vmatprep.subr.mxu1 %v2263_v1 }
 0x1c2   : > { %1342 = vrot.lane.b32.xlu1 %v817_v32, %s2264_s26 }
 0x1c6   : > { %706 = vrot.lane.b32.xlu1 %v2651_v35, %s2265_s24  ;;  %s2852_s24 = sld [smem:[#allocation34_spill]] }
 0x1cc   : > { %s2720_s22 = scalar_lea.hbm %s2852_s24, %s1727_s20 }
 0x226   : > { %v722_v38 = vpop.permute.xlu1 %721  ;;  %v701_v39 = vpop.permute.xlu0 %700 }
 0x227   : > { %725 = vst.msk [vmem:[#allocation2 + $0x18] sm:$0xff] %vm696_vm2, %v722_v38  ;;  %704 = vst.msk [vmem:[#allocation2 + $0x8] sm:$0xff] %vm696_vm2, %v701_v39 }
 0x22a   : > { %v712_v40 = vpop.permute.xlu0 %711 }
 0x22b   : > { %715 = vst.msk [vmem:[#allocation2 + $0x10] sm:$0xff] %vm696_vm2, %v712_v40 }
 0x22e   : > { %v993_v41 = vld [vmem:[#allocation2 + $0x8] sm:$0xff]  ;;  %v1339_v45 = vld [vmem:[#allocation2 + $0x18] sm:$0xff] }
 0x22f   : > { %1805 = vmatpush3.xpose.msk.msra.mxu0 %vm696_vm2, %v993_v41 }
 0x230   : > { %v997_v42 = vpop.permute.xlu1 %996  ;;  %1814 = vmatprep.subr.mxu0 %v2263_v1  ;;  %v1170_v44 = vpop.permute.xlu0 %1169 }
 0x232   : > { %1807 = vmatmul.mubr.msk.f32.vlgmr.msra.gmra.mrb[4].mxu0 %vm696_vm2, %v997_v42  ;;  %v1166_v43 = vld [vmem:[#allocation2 + $0x10] sm:$0xff] }
 0x233   : > { %1815 = vmatpush3.xpose.msk.msra.mxu0 %vm696_vm2, %v1166_v43  ;;  %1816 = vmatprep.mubr.msk.f32.mxu0 %vm2262_vm0, %v2263_v1 }
 0x234   : > { %1824 = vmatprep.subr.mxu0 %v2263_v1  ;;  %v1343_v46 = vpop.permute.xlu1 %1342 }
 0x236   : > { %1817 = vmatmul.mubr.msk.f32.vlgmr.msra.gmra.mrb[6].mxu0 %vm696_vm2, %v1170_v44 }
 0x237   : > { %1825 = vmatpush3.xpose.msk.msra.mxu0 %vm696_vm2, %v1339_v45  ;;  %1826 = vmatprep.mubr.msk.f32.mxu0 %vm2262_vm0, %v2263_v1 }
 0x238   : > { %v707_v58 = vpop.permute.xlu1 %706 }
 0x239   : > { %710 = vst.msk [vmem:[#allocation3 + $0x8] sm:$0xff] %vm696_vm2, %v707_v58 }
 0x23a   : > { %1827 = vmatmul.mubr.msk.f32.vlgmr.msra.gmra.mrb[8].mxu0 %vm696_vm2, %v1343_v46 }
 0x240   : > { %v995_v11 = vld [vmem:[#allocation3 + $0x8] sm:$0xff] }
 0x292   : > { %v895_v54 = vpop.f32.mrb[2].mxu1 }
 0x293   : > { %v905_v55 = vsel %vm904_vm4, -1e+09, %v895_v54  ;;  %v1798_v56 = vpop.f32.mrb[3].mxu1 }
 0x294   : > { %v906_v57 = vsel %vm696_vm2, %v905_v55, -inf }
 0x295   : > { %907 = vmax.xlane.f32.xlu0 %v906_v57 }
 0x305   : > { %v1069_v59 = vpop.f32.mrb[4].mxu0 }
 0x306   : > { %v1073_v60 = vsel %vm904_vm4, -1e+09, %v1069_v59  ;;  %v1808_v61 = vpop.f32.mrb[5].mxu0 }
 0x307   : > { %v1074_v62 = vsel %vm696_vm2, %v1073_v60, -inf }
 0x308   : > { %1075 = vmax.xlane.f32.xlu1 %v1074_v62 }
 0x309   : > { %v1242_v63 = vpop.f32.mrb[6].mxu0 }
 0x30a   : > { %v1246_v0 = vsel %vm904_vm4, -1e+09, %v1242_v63  ;;  %v1818_v2 = vpop.f32.mrb[7].mxu0 }
 0x30b   : > { %v1247_v3 = vsel %vm696_vm2, %v1246_v0, -inf }
 0x30c   : > { %1248 = vmax.xlane.f32.xlu0 %v1247_v3 }
 0x30d   : > { %v1415_v4 = vpop.f32.mrb[8].mxu0 }
 0x30e   : > { %v1419_v5 = vsel %vm904_vm4, -1e+09, %v1415_v4  ;;  %v1828_v6 = vpop.f32.mrb[9].mxu0 }
 0x30f   : > { %v1420_v7 = vsel %vm696_vm2, %v1419_v5, -inf }
 0x310   : > { %1421 = vmax.xlane.f32.xlu0 %v1420_v7 }
 0x319   : > { %726 = vrot.lane.b32.xlu1 %v2651_v35, %s2264_s26 }
 0x322   : > { %v908_v8 = vpop.xlane.xlu0 %907 }
 0x323   : > { %v909_v9 = vsub.f32 %v905_v55, %v908_v8 }
 0x325   : > { %v910_v10 = vmul.f32 1.442695, %v909_v9 }
 0x326   : > { %716 = vrot.lane.b32.xlu0 %v2651_v35, %s2266_s12  ;;  %s2271_s12 = smov [#allocation15]  }
 0x327   : > { %1967 = vpow2.f32 %v910_v10  ;;  %s2161_s13 = sshll.u32 %s2271_s12, 4  ;;  %s2162_s13 = int_to_ptr.vmem [resolvable:$false] %s2161_s13 }
 0x328   : > { %s2163_s28 = scalar_lea.vmem %s2162_s13, 256  ;;  %p2164_p6 = scmp.lt.s32.totalorder %s2722_s19, %s2162_s13 }
 0x329   : > { %p2165_p0 = scmp.lt.s32.totalorder %s2163_s28, %s2157_s17 }
 0x32b   : > { %p2166_p12 = por %p2165_p0, %p2164_p6 }
 0x32d   : > { %p2167_p8 = pnand %p2166_p12, %p2160_p13 }
 0x331   : > { %v1968_v12 = vpop.eup %1967 }
 0x332   : > { %1802 = vmatmul.mubr.msk.f32.vlgmr.msra.gmra.mrb[4].mxu1 %vm696_vm2, %v1968_v12  ;;  %v912_v27 = vsel %vm696_vm2, %v1968_v12, 0.0 }
 0x333   : > { %1810 = vmatpush3.msra.mxu1 %v995_v11  ;;  %1811 = vmatprep.mubr.msk.f32.mxu1 %vm2262_vm0, %v2263_v1 }
 0x334   : > { %1819 = vmatprep.subr.mxu1 %v2263_v1 }
 0x395   : > { %v1076_v13 = vpop.xlane.xlu1 %1075 }
 0x396   : > { %v1077_v14 = vsub.f32 %v1073_v60, %v1076_v13 }
 0x398   : > { %v1078_v15 = vmul.f32 1.442695, %v1077_v14 }
 0x399   : > { %v727_v16 = vpop.permute.xlu1 %726  ;;  %v1249_v17 = vpop.xlane.xlu0 %1248 }
 0x39a   : > { %1969 = vpow2.f32 %v1078_v15  ;;  %730 = vst.msk [vmem:[#allocation3 + $0x18] sm:$0xff] %vm696_vm2, %v727_v16  ;;  %v1250_v18 = vsub.f32 %v1246_v0, %v1249_v17 }
 0x39c   : > { %v1251_v19 = vmul.f32 1.442695, %v1250_v18 }
 0x39d   : > { %v1422_v20 = vpop.xlane.xlu0 %1421 }
 0x39e   : > { %1971 = vpow2.f32 %v1251_v19  ;;  %v1423_v21 = vsub.f32 %v1419_v5, %v1422_v20 }
 0x3a0   : > { %v1424_v22 = vmul.f32 1.442695, %v1423_v21 }
 0x3a1   : > { %v717_v23 = vpop.permute.xlu0 %716  ;;  %v1341_v31 = vld [vmem:[#allocation3 + $0x18] sm:$0xff] }
 0x3a2   : > { %1973 = vpow2.f32 %v1424_v22  ;;  %720 = vst.msk [vmem:[#allocation3 + $0x10] sm:$0xff] %vm696_vm2, %v717_v23 }
 0x3a4   : > { %v1970_v24 = vpop.eup %1969 }
 0x3a5   : > { %1812 = vmatmul.mubr.msk.f32.vlgmr.msra.gmra.mrb[6].mxu1 %vm696_vm2, %v1970_v24  ;;  %v1080_v25 = vsel %vm696_vm2, %v1970_v24, 0.0 }
 0x3a6   : > { %1081 = vadd.xlane.f32.xlu1 %v1080_v25  ;;  %1821 = vmatprep.mubr.msk.f32.mxu1 %vm2262_vm0, %v2263_v1 }
 0x3a8   : > { %v1972_v26 = vpop.eup %1971 }
 0x3a9   : > { %v1253_v28 = vsel %vm696_vm2, %v1972_v26, 0.0  ;;  %v1168_v29 = vld [vmem:[#allocation3 + $0x10] sm:$0xff] }
 0x3aa   : > { %913 = vadd.xlane.f32.xlu1 %v912_v27  ;;  %1254 = vadd.xlane.f32.xlu0 %v1253_v28 }
 0x3ab   : > { %1820 = vmatpush3.msra.mxu1 %v1168_v29 }
 0x3ac   : > { %v1974_v30 = vpop.eup %1973  ;;  %1822 = vmatmul.mubr.msk.f32.vlgmr.msra.gmra.mrb[8].mxu1 %vm696_vm2, %v1972_v26  ;;  %1829 = vmatprep.subr.mxu1 %v2263_v1 }
 0x3ad   : > { %1830 = vmatpush3.msra.mxu1 %v1341_v31  ;;  %v1426_v32 = vsel %vm696_vm2, %v1974_v30, 0.0  ;;  %1831 = vmatprep.mubr.msk.f32.mxu1 %vm2262_vm0, %v2263_v1 }
 0x3ae   : > { %1427 = vadd.xlane.f32.xlu0 %v1426_v32 }
 0x3b0   : > { %1832 = vmatmul.mubr.msk.f32.vlgmr.msra.gmra.mrb[10].mxu1 %vm696_vm2, %v1974_v30 }
 0x405   : > { %v986_v33 = vpop.f32.mrb[4].mxu1 }
 0x406   : > { %v1803_v34 = vpop.f32.mrb[5].mxu1 }
 0x433   : > { %v1082_v35 = vpop.xlane.xlu1 %1081 }
 0x437   : > { %v914_v36 = vpop.xlane.xlu1 %913  ;;  %v1255_v39 = vpop.xlane.xlu0 %1254 }
 0x438   : > { %1975 = vrcp.f32 %v914_v36 }
 0x439   : > { %1977 = vrcp.f32 %v1082_v35 }
 0x43a   : > { %1979 = vrcp.f32 %v1255_v39 }
 0x43b   : > { %v1428_v40 = vpop.xlane.xlu0 %1427 }
 0x43c   : > { %1981 = vrcp.f32 %v1428_v40 }
 0x442   : > { %v1976_v37 = vpop.eup %1975 }
 0x443   : > { %v990_v38 = vmul.f32 %v1976_v37, %v986_v33  ;;  %v1978_v1 = vpop.eup %1977 }
 0x444   : > { %v1980_v44 = vpop.eup %1979 }
 0x445   : > { %991 = vst.msk [vmem:[%s2709_s16] sm:$0xff] %vm696_vm2, %v990_v38 }
 0x446   : > { %v1982_v48 = vpop.eup %1981 }
 0x478   : > { %v1154_v41 = vpop.f32.mrb[6].mxu1 }
 0x479   : > { %v1158_v42 = vmul.f32 %v1978_v1, %v1154_v41  ;;  %v1813_v43 = vpop.f32.mrb[7].mxu1 }
 0x47b   : > { %1160 = vrot.lane.b32.xlu0 %v1158_v42, %s2268_s10 }
 0x47f   : > { %v1327_v45 = vpop.f32.mrb[8].mxu1 }
 0x480   : > { %v1331_v46 = vmul.f32 %v1980_v44, %v1327_v45  ;;  %v1823_v47 = vpop.f32.mrb[9].mxu1 }
 0x482   : > { %1333 = vrot.lane.b32.xlu1 %v1331_v46, %s2269_s5 }
 0x483   : > { %v1500_v49 = vpop.f32.mrb[10].mxu1 }
 0x484   : > { %v1504_v50 = vmul.f32 %v1982_v48, %v1500_v49  ;;  %v1833_v51 = vpop.f32.mrb[11].mxu1 }
 0x486   : > { %1506 = vrot.lane.b32.xlu1 %v1504_v50, %s2270_s23 }
 0x4ed   : > { %v1161_v52 = vpop.permute.xlu0 %1160 }
 0x4ee   : > { %1164 = vst.msk [vmem:[%s2709_s16] sm:$0xff] %vm1163_vm5, %v1161_v52 }
 0x4f4   : > { %v1334_v53 = vpop.permute.xlu1 %1333 }
 0x4f5   : > { %1337 = vst.msk [vmem:[%s2709_s16] sm:$0xff] %vm1336_vm6, %v1334_v53 }
 0x4f8   : > { %v1507_v54 = vpop.permute.xlu1 %1506 }
 0x4f9   : > { %1510 = vst.msk [vmem:[%s2709_s16] sm:$0xff] %vm1509_vm7, %v1507_v54 }
 0x4fa   : > { %2170 = shalt.err (!%p2167_p8)
}
 0x4fb   : > { %s2171_s4 = scalar_lea.hbm %s2720_s22, 128  ;;  %s2175_s25 = scalar_lea.hbm %s2852_s24, 256 }
 0x4fc   : > { %p2172_p11 = scmp.ne.s32.totalorder %s2720_s22, %s2171_s4  ;;  %p2176_p9 = scmp.lt.u32.totalorder %s2720_s22, %s2852_s24 }
 0x4fd   : > { %p2177_p2 = scmp.lt.u32.totalorder %s2175_s25, %s2171_s4  ;;  %p2179_p7 = scmp.lt.u32.totalorder %s2171_s4, %s2720_s22 }
 0x4fe   : > { %p2173_p10 = pnand %p2172_p11, %p2853_p3 }
 0x4ff   : > { %p2178_p4 = por %p2177_p2, %p2176_p9 }
 0x500   : > { %p2174_p5 = pneg %p2173_p10 }
 0x501   : > { %p2180_p1 = por %p2179_p7, %p2178_p4 }
 0x503   : > { %p2181_p13 = pnand %p2180_p1, %p2174_p5 }
 0x505   : > { %2184 = shalt.err (!%p2181_p13)
}
 0x506   : > { %1870 = dma.vmem_to_hbm [thread:$0]  (%p2853_p3), %s2722_s19, 128, %s2720_s22, %s1512_s1  }
 0x507 PF: > { %s2854_s11 = sld [smem:[#allocation21_spill]]  ;;  %s2855_s9 = sld [smem:[#allocation25_spill]] }
 0x508   : > { %s2856_s16 = sld [smem:[#allocation24_spill]] }
 0x50d   : > { %s1538_s10 = sand.u32 1, %s2854_s11   ;;  %p2857_p6 = scmp.ne.s32.totalorder %s2855_s9, 0 }
 0x50e   : > { %p2858_p0 = scmp.ge.s32.totalorder %s2856_s16, 2  ;;  %s1539_s5 = scalar_lea.sflag [#allocation6], %s1538_s10 }
 0x510   : > { %p1893_p12 = pnand %p2858_p0, %p2857_p6 }
 0x512   : > { %2226 = dma.done.wait (!%p1893_p12), %s1539_s5, 128  }
 0x513   : > { %2228 = vsyncadd (!%p1893_p12), %s1539_s5, 4294967168  ;;  %s31_s18 = sadd.s32 1, %s2856_s16   ;;  %s2859_s23 = sld [smem:[#allocation28_spill]] }
 0x514   : > { %p28_p8 = scmp.ge.s32.totalorder %s31_s18, 4   ;;  %s2860_s16 = sld [smem:[#allocation23_spill]] }
 0x515   : > { %s2861_s17 = sld [smem:[#allocation26_spill]]  ;;  %s2862_s13 = smov %s2235_s14 }
 0x516   : > { %s2863_s14 = smov %s2239_s15  ;;  %30 = sbr.rel (!%p28_p8) target bundleno = 17 (0x11), region = 160 }
 0x519   : > { %s2864_s15 = smov %s2859_s23 }
 0x51d   :  { %1544 = vsyncpa [#allocation5], 1 }
 0x51e   :  { %1546 = vsyncpa [#allocation5 + $0x1], 1 }
 0x51f   :  { %1547 = vsyncpa [#allocation8], 1 }
 0x520   :  { %1549 = vsyncpa [#allocation8 + $0x1], 1 }
 0x521   :  { %1550 = vsyncpa [#allocation11], 1 }
 0x522   :  { %1551 = vsyncpa [#allocation14], 1 }
 0x523   :  { %1552 = vsyncpa [#allocation6], 1 }
 0x524   :  { %1554 = vsyncpa [#allocation6 + $0x1], 1 }

</bundles_post_ra>
